<compile_context>
chip_gen: v6e
topology: v6e:2x2x1
jax: 0.10.0
libtpu: 0.0.40
codegen_flags: <defaults>
</compile_context>

<pallas_src>
import math

import jax
import jax.numpy as jnp
from jax.experimental import pallas as pl
from jax.experimental.pallas import tpu as pltpu


_INV_SQRT2 = 1.0 / math.sqrt(2.0)


def _erf(x):
    """erf via Abramowitz & Stegun 7.1.26 (|error| < 1.5e-7).

    Uses only compare/select/mul/add/div + exp, all of which lower cleanly in
    Mosaic (exp goes to the EUP slot, the rest is VPU work).
    """
    a1, a2, a3, a4, a5 = (0.254829592, -0.284496736, 1.421413741,
                          -1.453152027, 1.061405429)
    p = 0.3275911
    neg = x < 0.0
    z = jnp.where(neg, -x, x)
    t = 1.0 / (1.0 + p * z)
    poly = ((((a5 * t + a4) * t + a3) * t + a2) * t + a1) * t
    y = 1.0 - poly * jnp.exp(-(z * z))
    return jnp.where(neg, -y, y)


def _gelu_exact(x):
    return 0.5 * x * (1.0 + _erf(x * _INV_SQRT2))


def ffn_kernel(x_ref, wfc_ref, bfc_ref, wproj_ref, bproj_ref, o_ref, acc_ref):
    """One (row-tile i, hidden-tile k) grid step."""
    k = pl.program_id(1)

    @pl.when(k == 0)
    def _init():
        # Fold the c_proj bias into the accumulator init (added exactly once).
        acc_ref[...] = jnp.broadcast_to(
            bproj_ref[...].astype(jnp.float32), acc_ref.shape)

    # c_fc on this hidden tile: (tm, D) @ (D, th) + (1, th), f32 accumulation.
    h = jnp.dot(x_ref[...], wfc_ref[...],
                preferred_element_type=jnp.float32) + bfc_ref[...]
    h = _gelu_exact(h)

    # Partial c_proj contribution: (tm, th) @ (th, D), accumulated in f32.
    acc_ref[...] += jnp.dot(h.astype(wproj_ref.dtype), wproj_ref[...],
                            preferred_element_type=jnp.float32)

    @pl.when(k == pl.num_programs(1) - 1)
    def _finalize():
        o_ref[...] = acc_ref[...].astype(o_ref.dtype)


def _pick_tile(n, max_tile, align):
    """Largest divisor of n that is <= max_tile and a multiple of `align`;
    falls back to the full extent n if none exists (Pallas allows full dims)."""
    if n <= max_tile:
        return n
    t = (max_tile // align) * align
    while t >= align:
        if n % t == 0:
            return t
        t -= align
    return n


def feedforward_forward(x, wfc, bfc, wproj, bproj, *,
                        row_tile=256, hidden_tile=512, compute_dtype=None):
    """y = gelu(x @ wfc + bfc) @ wproj + bproj.

    x:     (..., dim)            wfc: (dim, hdim)    bfc: (1, hdim)
    wproj: (hdim, dim)           bproj: (1, dim)
    Weights are stored (in_features, out_features), i.e. torch W^T.
    """
    *lead, d = x.shape
    m = math.prod(lead) if lead else 1
    hdim = wfc.shape[1]
    out_dtype = x.dtype

    x2 = x.reshape(m, d)
    if compute_dtype is not None:       # optional bf16 MXU path (f32 accumulate)
        x2 = x2.astype(compute_dtype)
        wfc = wfc.astype(compute_dtype)
        wproj = wproj.astype(compute_dtype)

    tm = _pick_tile(m, row_tile, 8)         # sublane-aligned row tile
    th = _pick_tile(hdim, hidden_tile, 128)  # lane-aligned hidden tile
    grid = (m // tm, hdim // th)

    out = pl.pallas_call(
        ffn_kernel,
        out_shape=jax.ShapeDtypeStruct((m, d), out_dtype),
        grid_spec=pltpu.PrefetchScalarGridSpec(
            num_scalar_prefetch=0,
            grid=grid,
            in_specs=[
                pl.BlockSpec((tm, d), lambda i, k: (i, 0)),    # x row tile
                pl.BlockSpec((d, th), lambda i, k: (0, k)),    # Wfc col tile
                pl.BlockSpec((1, th), lambda i, k: (0, k)),    # bfc tile
                pl.BlockSpec((th, d), lambda i, k: (k, 0)),    # Wproj row tile
                pl.BlockSpec((1, d), lambda i, k: (0, 0)),     # bproj
            ],
            out_specs=pl.BlockSpec((tm, d), lambda i, k: (i, 0)),
            scratch_shapes=[pltpu.VMEM((tm, d), jnp.float32)],
        ),
        compiler_params=pltpu.CompilerParams(
            dimension_semantics=("parallel", "arbitrary")),
    )(x2, wfc, bfc, wproj, bproj)

    return out.reshape(*lead, d)


def reference_forward(x, wfc, bfc, wproj, bproj):
    h = jax.nn.gelu(jnp.matmul(x, wfc) + bfc[0], approximate=False)
    return jnp.matmul(h, wproj) + bproj[0]


if __name__ == "__main__":
    # GPT-2-style MLP at small shapes: dim=32, hdim=4*dim=128, seq=8, batch=2.
    B, T, D, H = 2, 8, 32, 128

    key = jax.random.PRNGKey(0)
    kx, k1, k2, k3, k4 = jax.random.split(key, 5)

    x = jax.random.normal(kx, (B, T, D), dtype=jnp.float32)
    # Parameters in (in_features, out_features) layout for the kernel matmuls.
    wfc = jax.random.normal(k1, (D, H), dtype=jnp.float32) * 0.02
    bfc = jax.random.normal(k2, (1, H), dtype=jnp.float32) * 0.02
    wproj = jax.random.normal(k3, (H, D), dtype=jnp.float32) * 0.02
    bproj = jax.random.normal(k4, (1, D), dtype=jnp.float32) * 0.02

    y = feedforward_forward(x, wfc, bfc, wproj, bproj)
    y = jax.block_until_ready(y)

    y_ref = reference_forward(x, wfc, bfc, wproj, bproj)
    assert y.shape == y_ref.shape, "shape mismatch vs reference"
    assert jnp.allclose(y, y_ref, atol=1e-4, rtol=1e-4), "mismatch vs reference"

    print("KERNEL_OK")
</pallas_src>

<mosaic_0001>
module attributes {stable_mosaic.version = 11 : i64} {
  func.func @ffn_kernel(%arg0: i32, %arg1: i32, %arg2: memref<16x32xf32, #tpu.memory_space<vmem>>, %arg3: memref<32x128xf32, #tpu.memory_space<vmem>>, %arg4: memref<1x128xf32, #tpu.memory_space<vmem>>, %arg5: memref<128x32xf32, #tpu.memory_space<vmem>>, %arg6: memref<1x32xf32, #tpu.memory_space<vmem>>, %arg7: memref<16x32xf32, #tpu.memory_space<vmem>>, %arg8: memref<16x32xf32, #tpu.memory_space<vmem>>) attributes {dimension_semantics = [#tpu.dimension_semantics<parallel>, #tpu.dimension_semantics<arbitrary>], iteration_bounds = array<i64: 1, 1>, scalar_prefetch = 0 : i64, scratch_operands = 1 : i64, tpu.core_type = #tpu.core_type<tc>, window_params = [{transform_indices = @transform_0, window_bounds = array<i64: 16, 32>}, {transform_indices = @transform_1, window_bounds = array<i64: 32, 128>}, {transform_indices = @transform_2, window_bounds = array<i64: 1, 128>}, {transform_indices = @transform_3, window_bounds = array<i64: 128, 32>}, {pipeline_mode = #tpu.pipeline_mode<synchronous>, transform_indices = @transform_4, window_bounds = array<i64: 1, 32>}, {transform_indices = @transform_5, window_bounds = array<i64: 16, 32>}]} {
    %c0_i32 = arith.constant 0 : i32
    %0 = arith.cmpi eq, %arg1, %c0_i32 : i32
    %1 = arith.extui %0 : i1 to i32
    %c0_i32_0 = arith.constant 0 : i32
    %2 = arith.cmpi ne, %1, %c0_i32_0 : i32
    scf.if %2 {
      %c0_31 = arith.constant 0 : index
      %c0_32 = arith.constant 0 : index
      %59 = vector.load %arg6[%c0_31, %c0_32] : memref<1x32xf32, #tpu.memory_space<vmem>>, vector<1x32xf32>
      %60 = vector.shape_cast %59 : vector<1x32xf32> to vector<1x32xf32>
      %61 = vector.broadcast %60 : vector<1x32xf32> to vector<16x32xf32>
      %c0_33 = arith.constant 0 : index
      %c0_34 = arith.constant 0 : index
      %62 = vector.load %arg8[%c0_33, %c0_34] : memref<16x32xf32, #tpu.memory_space<vmem>>, vector<16x32xf32>
      tpu.vector_store %arg8[%c0_33, %c0_34], %61 {strides = array<i32>} : memref<16x32xf32, #tpu.memory_space<vmem>>, vector<16x32xf32>,
    } else {
    }
    %c0 = arith.constant 0 : index
    %c0_1 = arith.constant 0 : index
    %3 = vector.load %arg2[%c0, %c0_1] : memref<16x32xf32, #tpu.memory_space<vmem>>, vector<16x32xf32>
    %c0_2 = arith.constant 0 : index
    %c0_3 = arith.constant 0 : index
    %4 = vector.load %arg3[%c0_2, %c0_3] : memref<32x128xf32, #tpu.memory_space<vmem>>, vector<32x128xf32>
    %cst = arith.constant dense<0.000000e+00> : vector<16x128xf32>
    %5 = tpu.matmul %3, %4, %cst {dimension_numbers = #tpu.dot_dimension_numbers<[1], [0], [0], [1], [0, 0, 1, 1], [], []>} : vector<16x32xf32>, vector<32x128xf32>, vector<16x128xf32> -> vector<16x128xf32>
    %c0_4 = arith.constant 0 : index
    %c0_5 = arith.constant 0 : index
    %6 = vector.load %arg4[%c0_4, %c0_5] : memref<1x128xf32, #tpu.memory_space<vmem>>, vector<1x128xf32>
    %7 = vector.broadcast %6 : vector<1x128xf32> to vector<16x128xf32>
    %8 = arith.addf %5, %7 : vector<16x128xf32>
    %cst_6 = arith.constant 5.000000e-01 : f32
    %9 = vector.broadcast %cst_6 : f32 to vector<16x128xf32>
    %10 = arith.mulf %9, %8 : vector<16x128xf32>
    %cst_7 = arith.constant 0.707106769 : f32
    %11 = vector.broadcast %cst_7 : f32 to vector<16x128xf32>
    %12 = arith.mulf %8, %11 : vector<16x128xf32>
    %cst_8 = arith.constant 0.000000e+00 : f32
    %13 = vector.broadcast %cst_8 : f32 to vector<16x128xf32>
    %14 = arith.cmpf olt, %12, %13 : vector<16x128xf32>
    %cst_9 = arith.constant 0.000000e+00 : f32
    %15 = vector.broadcast %cst_9 : f32 to vector<16x128xf32>
    %16 = arith.subf %15, %12 : vector<16x128xf32>
    %17 = arith.select %14, %16, %12 : vector<16x128xi1>, vector<16x128xf32>
    %cst_10 = arith.constant 0.327591091 : f32
    %18 = vector.broadcast %cst_10 : f32 to vector<16x128xf32>
    %19 = arith.mulf %18, %17 : vector<16x128xf32>
    %cst_11 = arith.constant 1.000000e+00 : f32
    %20 = vector.broadcast %cst_11 : f32 to vector<16x128xf32>
    %21 = arith.addf %20, %19 : vector<16x128xf32>
    %cst_12 = arith.constant 1.000000e+00 : f32
    %22 = vector.broadcast %cst_12 : f32 to vector<16x128xf32>
    %23 = arith.divf %22, %21 : vector<16x128xf32>
    %cst_13 = arith.constant 1.06140542 : f32
    %24 = vector.broadcast %cst_13 : f32 to vector<16x128xf32>
    %25 = arith.mulf %24, %23 : vector<16x128xf32>
    %cst_14 = arith.constant -1.45315206 : f32
    %26 = vector.broadcast %cst_14 : f32 to vector<16x128xf32>
    %27 = arith.addf %25, %26 : vector<16x128xf32>
    %28 = arith.mulf %27, %23 : vector<16x128xf32>
    %cst_15 = arith.constant 1.42141378 : f32
    %29 = vector.broadcast %cst_15 : f32 to vector<16x128xf32>
    %30 = arith.addf %28, %29 : vector<16x128xf32>
    %31 = arith.mulf %30, %23 : vector<16x128xf32>
    %cst_16 = arith.constant -0.284496725 : f32
    %32 = vector.broadcast %cst_16 : f32 to vector<16x128xf32>
    %33 = arith.addf %31, %32 : vector<16x128xf32>
    %34 = arith.mulf %33, %23 : vector<16x128xf32>
    %cst_17 = arith.constant 0.254829586 : f32
    %35 = vector.broadcast %cst_17 : f32 to vector<16x128xf32>
    %36 = arith.addf %34, %35 : vector<16x128xf32>
    %37 = arith.mulf %36, %23 : vector<16x128xf32>
    %38 = arith.mulf %17, %17 : vector<16x128xf32>
    %cst_18 = arith.constant 0.000000e+00 : f32
    %39 = vector.broadcast %cst_18 : f32 to vector<16x128xf32>
    %40 = arith.subf %39, %38 : vector<16x128xf32>
    %41 = math.exp %40 : vector<16x128xf32>
    %42 = arith.mulf %37, %41 : vector<16x128xf32>
    %cst_19 = arith.constant 1.000000e+00 : f32
    %43 = vector.broadcast %cst_19 : f32 to vector<16x128xf32>
    %44 = arith.subf %43, %42 : vector<16x128xf32>
    %cst_20 = arith.constant 0.000000e+00 : f32
    %45 = vector.broadcast %cst_20 : f32 to vector<16x128xf32>
    %46 = arith.subf %45, %44 : vector<16x128xf32>
    %47 = arith.select %14, %46, %44 : vector<16x128xi1>, vector<16x128xf32>
    %cst_21 = arith.constant 1.000000e+00 : f32
    %48 = vector.broadcast %cst_21 : f32 to vector<16x128xf32>
    %49 = arith.addf %48, %47 : vector<16x128xf32>
    %50 = arith.mulf %10, %49 : vector<16x128xf32>
    %c0_22 = arith.constant 0 : index
    %c0_23 = arith.constant 0 : index
    %51 = vector.load %arg8[%c0_22, %c0_23] : memref<16x32xf32, #tpu.memory_space<vmem>>, vector<16x32xf32>
    %c0_24 = arith.constant 0 : index
    %c0_25 = arith.constant 0 : index
    %52 = vector.load %arg5[%c0_24, %c0_25] : memref<128x32xf32, #tpu.memory_space<vmem>>, vector<128x32xf32>
    %cst_26 = arith.constant dense<0.000000e+00> : vector<16x32xf32>
    %53 = tpu.matmul %50, %52, %cst_26 {dimension_numbers = #tpu.dot_dimension_numbers<[1], [0], [0], [1], [0, 0, 1, 1], [], []>} : vector<16x128xf32>, vector<128x32xf32>, vector<16x32xf32> -> vector<16x32xf32>
    %54 = arith.addf %51, %53 : vector<16x32xf32>
    %c0_27 = arith.constant 0 : index
    %c0_28 = arith.constant 0 : index
    %55 = vector.load %arg8[%c0_27, %c0_28] : memref<16x32xf32, #tpu.memory_space<vmem>>, vector<16x32xf32>
    tpu.vector_store %arg8[%c0_27, %c0_28], %54 {strides = array<i32>} : memref<16x32xf32, #tpu.memory_space<vmem>>, vector<16x32xf32>,
    %c0_i32_29 = arith.constant 0 : i32
    %56 = arith.cmpi eq, %arg1, %c0_i32_29 : i32
    %57 = arith.extui %56 : i1 to i32
    %c0_i32_30 = arith.constant 0 : i32
    %58 = arith.cmpi ne, %57, %c0_i32_30 : i32
    scf.if %58 {
      %c0_31 = arith.constant 0 : index
      %c0_32 = arith.constant 0 : index
      %59 = vector.load %arg8[%c0_31, %c0_32] : memref<16x32xf32, #tpu.memory_space<vmem>>, vector<16x32xf32>
      %c0_33 = arith.constant 0 : index
      %c0_34 = arith.constant 0 : index
      %60 = vector.load %arg7[%c0_33, %c0_34] : memref<16x32xf32, #tpu.memory_space<vmem>>, vector<16x32xf32>
      tpu.vector_store %arg7[%c0_33, %c0_34], %59 {strides = array<i32>} : memref<16x32xf32, #tpu.memory_space<vmem>>, vector<16x32xf32>,
    } else {
    }
    return
  }
  func.func @transform_0(%arg0: i32, %arg1: i32) -> (i32, i32) {
    %c0_i32 = arith.constant 0 : i32
    %c0_i32_0 = arith.constant 0 : i32
    return %arg0, %c0_i32 : i32, i32
  }
  func.func @transform_1(%arg0: i32, %arg1: i32) -> (i32, i32) {
    %c0_i32 = arith.constant 0 : i32
    %c0_i32_0 = arith.constant 0 : i32
    return %c0_i32, %arg1 : i32, i32
  }
  func.func @transform_2(%arg0: i32, %arg1: i32) -> (i32, i32) {
    %c0_i32 = arith.constant 0 : i32
    %c0_i32_0 = arith.constant 0 : i32
    return %c0_i32, %arg1 : i32, i32
  }
  func.func @transform_3(%arg0: i32, %arg1: i32) -> (i32, i32) {
    %c0_i32 = arith.constant 0 : i32
    %c0_i32_0 = arith.constant 0 : i32
    return %arg1, %c0_i32 : i32, i32
  }
  func.func @transform_4(%arg0: i32, %arg1: i32) -> (i32, i32) {
    %c0_i32 = arith.constant 0 : i32
    %c0_i32_0 = arith.constant 0 : i32
    %c0_i32_1 = arith.constant 0 : i32
    return %c0_i32, %c0_i32_0 : i32, i32
  }
  func.func @transform_5(%arg0: i32, %arg1: i32) -> (i32, i32) {
    %c0_i32 = arith.constant 0 : i32
    %c0_i32_0 = arith.constant 0 : i32
    return %arg0, %c0_i32 : i32, i32
  }
}

</mosaic_0001>

<bundles_post_ra>
// kernel: tpu_custom_call.1
= control target key start
LH: loop header
LB: loop body
LE: loop exit
PB: predicated region body
PF: predicated region fallthrough
CT: control target
= control target key end

     0   :  { %vm32_vm0 = vcmask 261120   ;;  %s533_s0 = inlined_call_operand.vmem [shape: f32[16,32], index: 0, kind: input, shape index: {}]   ;;  %s534_s1 = inlined_call_operand.vmem [shape: f32[32,128], index: 1, kind: input, shape index: {}]   ;;  %s535_s2 = inlined_call_operand.vmem [shape: f32[1,128], index: 2, kind: input, shape index: {}]   ;;  %s536_s3 = inlined_call_operand.vmem [shape: f32[128,32], index: 3, kind: input, shape index: {}]   ;;  %s537_s4 = inlined_call_operand.vmem [shape: f32[1,32], index: 4, kind: input, shape index: {}]   ;;  %s538_s5 = inlined_call_operand.hbm [shape: f32[16,32], index: 5, kind: output, shape index: {}]  }
   0x1   :  { %v40_v0 = vld [vmem:[%s534_s1 + $0x18] sm:$0xff]  ;;  %v39_v1 = vld [vmem:[%s534_s1 + $0x10] sm:$0xff]  ;;  %v35_v2 = vld [vmem:[%s533_s0] sm:$0xff] }
   0x2   :  { %334 = vmatprep.subr.mxu0 %v40_v0  ;;  %v38_v3 = vld [vmem:[%s534_s1 + $0x8] sm:$0xff]  ;;  %342 = vmatprep.mubr.msk.f32.mxu0 %vm32_vm0, %v35_v2 }
   0x3   :  { %335 = vmatpush3.msra.mxu0 %v40_v0 }
   0x4   :  { %10 = vsyncpa [#allocation4], 0  ;;  %336 = vmatprep.subr.mxu0 %v39_v1  ;;  %v37_v4 = vld [vmem:[%s534_s1] sm:$0xff]  ;;  %v36_v5 = vld [vmem:[%s533_s0 + $0x8] sm:$0xff] }
   0x5   :  { %337 = vmatpush3.msra.mxu0 %v39_v1  ;;  %v203_v6 = vld [vmem:[%s536_s3 + $0x78] sm:$0xff]  ;;  %v202_v7 = vld [vmem:[%s536_s3 + $0x70] sm:$0xff]  ;;  %v201_v8 = vld [vmem:[%s536_s3 + $0x68] sm:$0xff] }
   0x6   :  { %338 = vmatprep.subr.mxu0 %v38_v3  ;;  %345 = vmatprep.subr.mxu1 %v203_v6  ;;  %v200_v9 = vld [vmem:[%s536_s3 + $0x60] sm:$0xff]  ;;  %v199_v10 = vld [vmem:[%s536_s3 + $0x58] sm:$0xff]  ;;  %v198_v11 = vld [vmem:[%s536_s3 + $0x50] sm:$0xff] }
   0x7   :  { %339 = vmatpush3.msra.mxu0 %v38_v3  ;;  %346 = vmatpush3.msra.mxu1 %v203_v6  ;;  %v197_v12 = vld [vmem:[%s536_s3 + $0x48] sm:$0xff]  ;;  %v196_v13 = vld [vmem:[%s536_s3 + $0x40] sm:$0xff]  ;;  %v195_v14 = vld [vmem:[%s536_s3 + $0x38] sm:$0xff] }
   0x8   :  { %340 = vmatprep.subr.mxu0 %v37_v4  ;;  %347 = vmatprep.subr.mxu1 %v202_v7  ;;  %v194_v15 = vld [vmem:[%s536_s3 + $0x30] sm:$0xff]  ;;  %v193_v16 = vld [vmem:[%s536_s3 + $0x28] sm:$0xff]  ;;  %v192_v17 = vld [vmem:[%s536_s3 + $0x20] sm:$0xff] }
   0x9   :  { %341 = vmatpush3.msra.mxu0 %v37_v4  ;;  %348 = vmatpush3.msra.mxu1 %v202_v7  ;;  %v191_v18 = vld [vmem:[%s536_s3 + $0x18] sm:$0xff]  ;;  %v190_v19 = vld [vmem:[%s536_s3 + $0x10] sm:$0xff]  ;;  %v189_v20 = vld [vmem:[%s536_s3 + $0x8] sm:$0xff] }
   0xa   :  { %343 = vmatmul.mubr.msk.f32.vlgmr.msra.gmra.mxu0 %vm32_vm0, %v36_v5  ;;  %349 = vmatprep.subr.mxu1 %v201_v8  ;;  %v188_v21 = vld [vmem:[%s536_s3] sm:$0xff] }
   0xb   :  { %350 = vmatpush3.msra.mxu1 %v201_v8  ;;  %v306_v22 = vld [vmem:[%s537_s4] ss:$0 sm:$0xff] }
   0xc   :  { %351 = vmatprep.subr.mxu1 %v200_v9  ;;  %34 = vst.msk [vmem:[#allocation2 + $0x8] sm:$0xff] %vm32_vm0, %v306_v22  ;;  %33 = vst.msk [vmem:[#allocation2] sm:$0xff] %vm32_vm0, %v306_v22  ;;  %v307_v23 = vld [vmem:[%s535_s2] ss:$0 sm:$0xff]  ;;  %s413_s2 = smov [#allocation3]  }
   0xd   :  { %352 = vmatpush3.msra.mxu1 %v200_v9  ;;  %s295_s3 = sshll.u32 %s413_s2, 4  ;;  %s296_s3 = int_to_ptr.vmem [resolvable:$true] %s295_s3 }
   0xe   :  { %353 = vmatprep.subr.mxu1 %v199_v10  ;;  %s391_s4 = scalar_lea.vmem %s296_s3, 256  ;;  %p396_p1 = scmp.lt.s32.totalorder %s296_s3, %s296_s3 }
   0xf   :  { %354 = vmatpush3.msra.mxu1 %v199_v10  ;;  %p392_p0 = scmp.ne.s32.totalorder %s296_s3, %s391_s4  ;;  %p397_p2 = scmp.lt.s32.totalorder %s391_s4, %s391_s4 }
  0x10   :  { %355 = vmatprep.subr.mxu1 %v198_v11 }
  0x11   :  { %356 = vmatpush3.msra.mxu1 %v198_v11  ;;  %p398_p3 = por %p397_p2, %p396_p1 }
  0x12   :  { %357 = vmatprep.subr.mxu1 %v197_v12 }
  0x13   :  { %358 = vmatpush3.msra.mxu1 %v197_v12  ;;  %p399_p4 = pnand %p398_p3, %p392_p0 }
  0x14   :  { %359 = vmatprep.subr.mxu1 %v196_v13 }
  0x15   :  { %360 = vmatpush3.msra.mxu1 %v196_v13 }
  0x16   :  { %361 = vmatprep.subr.mxu1 %v195_v14 }
  0x17   :  { %362 = vmatpush3.msra.mxu1 %v195_v14 }
  0x18   :  { %363 = vmatprep.subr.mxu1 %v194_v15 }
  0x19   :  { %364 = vmatpush3.msra.mxu1 %v194_v15 }
  0x1a   :  { %365 = vmatprep.subr.mxu1 %v193_v16 }
  0x1b   :  { %366 = vmatpush3.msra.mxu1 %v193_v16  ;;  %v187_v16 = vld [vmem:[#allocation2 + $0x8] sm:$0xff] }
  0x1c   :  { %367 = vmatprep.subr.mxu1 %v192_v17 }
  0x1d   :  { %368 = vmatpush3.msra.mxu1 %v192_v17 }
  0x1e   :  { %369 = vmatprep.subr.mxu1 %v191_v18 }
  0x1f   :  { %370 = vmatpush3.msra.mxu1 %v191_v18  ;;  %v186_v18 = vld [vmem:[#allocation2] sm:$0xff] }
  0x20   :  { %371 = vmatprep.subr.mxu1 %v190_v19 }
  0x21   :  { %372 = vmatpush3.msra.mxu1 %v190_v19 }
  0x22   :  { %373 = vmatprep.subr.mxu1 %v189_v20 }
  0x23   :  { %374 = vmatpush3.msra.mxu1 %v189_v20 }
  0x24   :  { %375 = vmatprep.subr.mxu1 %v188_v21 }
  0x25   :  { %376 = vmatpush3.msra.mxu1 %v188_v21 }
  0xca   :  { %v344_v24 = vpop.f32.mrf.mxu0 }
  0xcb   :  { %v127_v25 = vadd.f32 %v344_v24, %v307_v23 }
  0xcc   :  { %v121_v26 = vpop.f32.mrf.mxu0 }
  0xcd   :  { %v133_v27 = vmul.f32 0.70710677, %v127_v25  ;;  %v122_v28 = vadd.f32 %v307_v23, %v121_v26  ;;  %v131_v13 = vmul.f32 0.5, %v127_v25 }
  0xcf   :  { %vm135_vm1 = vcmp.lt.f32.partialorder %v133_v27, 0.0  ;;  %v137_v29 = vsub.f32 0.0, %v133_v27  ;;  %v132_v30 = vmul.f32 0.70710677, %v122_v28  ;;  %v130_v11 = vmul.f32 0.5, %v122_v28 }
  0xd1   :  { %v139_v31 = vsel %vm135_vm1, %v137_v29, %v133_v27  ;;  %v136_v32 = vsub.f32 0.0, %v132_v30  ;;  %vm134_vm2 = vcmp.lt.f32.partialorder %v132_v30, 0.0 }
  0xd2   :  { %v141_v33 = vmul.f32 0.3275911, %v139_v31  ;;  %v167_v38 = vmul.f32 %v139_v31, %v139_v31 }
  0xd3   :  { %v138_v34 = vsel %vm134_vm2, %v136_v32, %v132_v30 }
  0xd4   :  { %v143_v35 = vadd.f32 1.0, %v141_v33  ;;  %v140_v36 = vmul.f32 0.3275911, %v138_v34  ;;  %v166_v39 = vmul.f32 %v138_v34, %v138_v34  ;;  %v169_v40 = vsub.f32 0.0, %v167_v38 }
  0xd6   :  { %383 = vrcp.f32 %v143_v35  ;;  %v142_v37 = vadd.f32 1.0, %v140_v36  ;;  %v168_v42 = vsub.f32 0.0, %v166_v39  ;;  %v172_v43 = vmul.f32 1.442695, %v169_v40 }
  0xd8   :  { %385 = vrcp.f32 %v142_v37  ;;  %v170_v48 = vmul.f32 1.442695, %v168_v42 }
  0xd9   :  { %387 = vpow2.f32 %v172_v43 }
  0xda   :  { %389 = vpow2.f32 %v170_v48 }
  0xe3   :  { %v384_v41 = vpop.eup %383 }
  0xe4   :  { %v149_v44 = vmul.f32 1.0614054, %v384_v41 }
  0xe5   :  { %v386_v45 = vpop.eup %385 }
  0xe6   :  { %v151_v46 = vadd.f32 -1.4531521, %v149_v44  ;;  %v148_v47 = vmul.f32 1.0614054, %v386_v45  ;;  %v388_v62 = vpop.eup %387 }
  0xe7   :  { %v390_v2 = vpop.eup %389 }
  0xe8   :  { %v153_v49 = vmul.f32 %v384_v41, %v151_v46  ;;  %v150_v50 = vadd.f32 -1.4531521, %v148_v47 }
  0xea   :  { %v155_v51 = vadd.f32 1.4214138, %v153_v49  ;;  %v152_v52 = vmul.f32 %v386_v45, %v150_v50 }
  0xec   :  { %v157_v53 = vmul.f32 %v384_v41, %v155_v51  ;;  %v154_v54 = vadd.f32 1.4214138, %v152_v52 }
  0xee   :  { %v159_v55 = vadd.f32 -0.28449672, %v157_v53  ;;  %v156_v56 = vmul.f32 %v386_v45, %v154_v54 }
  0xf0   :  { %v161_v57 = vmul.f32 %v384_v41, %v159_v55  ;;  %v158_v58 = vadd.f32 -0.28449672, %v156_v56 }
  0xf2   :  { %v163_v59 = vadd.f32 0.2548296, %v161_v57  ;;  %v160_v60 = vmul.f32 %v386_v45, %v158_v58 }
  0xf4   :  { %v165_v61 = vmul.f32 %v384_v41, %v163_v59  ;;  %v162_v63 = vadd.f32 0.2548296, %v160_v60 }
  0xf6   :  { %v175_v0 = vmul.f32 %v388_v62, %v165_v61  ;;  %v164_v1 = vmul.f32 %v386_v45, %v162_v63 }
  0xf8   :  { %v177_v3 = vsub.f32 1.0, %v175_v0  ;;  %v174_v4 = vmul.f32 %v390_v2, %v164_v1 }
  0xfa   :  { %v179_v5 = vsub.f32 0.0, %v177_v3  ;;  %v176_v6 = vsub.f32 1.0, %v174_v4 }
  0xfc   :  { %v181_v7 = vsel %vm135_vm1, %v179_v5, %v177_v3  ;;  %v178_v8 = vsub.f32 0.0, %v176_v6 }
  0xfd   :  { %v183_v10 = vadd.f32 1.0, %v181_v7 }
  0xfe   :  { %v180_v9 = vsel %vm134_vm2, %v178_v8, %v176_v6 }
  0xff   :  { %v182_v12 = vadd.f32 1.0, %v180_v9  ;;  %v185_v15 = vmul.f32 %v183_v10, %v131_v13 }
 0x101   :  { %v184_v14 = vmul.f32 %v182_v12, %v130_v11 }
 0x103   :  { %377 = vmatprep.mubr.f32.mxu1 %v184_v14 }
 0x104   :  { %378 = vmatmul.mubr.f32.vlgmr.msra.gmra.mxu1 %v185_v15 }
 0x1c4   :  { %v379_v17 = vpop.f32.mrf.mxu1 }
 0x1c5   :  { %v280_v19 = vadd.f32 %v379_v17, %v187_v16 }
 0x1c6   :  { %v270_v20 = vpop.f32.mrf.mxu1 }
 0x1c7   :  { %282 = vst.msk [vmem:[#allocation2 + $0x8] sm:$0xff] %vm32_vm0, %v280_v19  ;;  %v279_v21 = vadd.f32 %v270_v20, %v186_v18 }
 0x1c9   :  { %281 = vst.msk [vmem:[#allocation2] sm:$0xff] %vm32_vm0, %v279_v21 }
 0x1ce   :  { %v287_v22 = vld [vmem:[#allocation2 + $0x8] sm:$0xff] }
 0x1cf   :  { %289 = vst.msk [vmem:[#allocation3 + $0x8] sm:$0xff] %vm32_vm0, %v287_v22 }
 0x1d0   :  { %v286_v23 = vld [vmem:[#allocation2] sm:$0xff] }
 0x1d1   :  { %288 = vst.msk [vmem:[#allocation3] sm:$0xff] %vm32_vm0, %v286_v23 }
 0x1d2   :  { %402 = shalt.err (!%p399_p4)
}
 0x1d3   :  { %s414_s12 = smov 128   ;;  %s415_s13 = smov 8  }
 0x1d4   :  { %301 = dma.vmem_to_hbm [thread:$0]  %s296_s3, 256, %s538_s5, [#allocation4], %s414_s12, %s414_s12, %s415_s13  }
 0x1d5   :  { %411 = dma.done.wait [#allocation4], 256  }
 0x1d6   :  { %412 = vsyncadd [#allocation4], 4294967040 }
 0x1d7   :  { %305 = vsyncpa [#allocation4], 1 }

</bundles_post_ra>
